<compile_context>
chip_gen: v5e
topology: v5e:2x2
jax: 0.10.0
libtpu: 0.0.40
codegen_flags: <defaults>
</compile_context>

<pallas_src>
import functools

import jax
import jax.numpy as jnp
from jax.experimental import pallas as pl
from jax.experimental.pallas import tpu as pltpu

LN_EPS = 1e-5      # nn.LayerNorm default eps
LANE = 128         # TPU lane width


def _round_up(n, m):
    return ((n + m - 1) // m) * m


def _masked_layernorm(h, gamma, beta, true_n):
    """LayerNorm over the last axis where only the first `true_n` columns hold
    real data. Padded columns of `h` are exactly zero on entry and gamma/beta
    are zero-padded, so padded outputs stay exactly zero."""
    n_pad = h.shape[-1]
    col = jax.lax.broadcasted_iota(jnp.int32, (1, n_pad), 1)
    mask = (col < true_n).astype(h.dtype)
    inv_n = 1.0 / float(true_n)
    mu = jnp.sum(h, axis=-1, keepdims=True) * inv_n           # pad cols are 0
    d = (h - mu) * mask
    var = jnp.sum(d * d, axis=-1, keepdims=True) * inv_n
    return d * jax.lax.rsqrt(var + LN_EPS) * gamma + beta


def net_ln2_kernel(x_ref, w1_ref, p1_ref, w2_ref, p2_ref, o_ref,
                   *, n_hidden, n_out):
    # fc1: bf16 MXU matmul, f32 accumulation
    h = jnp.dot(x_ref[...], w1_ref[...], preferred_element_type=jnp.float32)
    p1 = p1_ref[...]                      # (8, Hp) f32; rows 0..2 = b1, g1, be1
    h = h + p1[0:1, :]
    h = _masked_layernorm(h, p1[1:2, :], p1[2:3, :], n_hidden)
    h = jnp.maximum(h, 0.0)

    # fc2
    z = jnp.dot(h.astype(jnp.bfloat16), w2_ref[...],
                preferred_element_type=jnp.float32)
    p2 = p2_ref[...]                      # (8, Dp) f32; rows 0..2 = b2, g2, be2
    z = z + p2[0:1, :]
    z = _masked_layernorm(z, p2[1:2, :], p2[2:3, :], n_out)
    z = jnp.maximum(z, 0.0)

    o_ref[...] = z.astype(o_ref.dtype)


def net_ln2_forward(x, params, *, block_b=128):
    """Fused forward pass of Net_ln2.

    x: (B, n_feature) float32
    params: dict with w1 (F,H), b1/g1/be1 (H,), w2 (H,D), b2/g2/be2 (D,)
    returns: (B, D) float32   (final .view(B, -1) is a no-op for 2-D input)
    """
    B, F = x.shape
    H = params["w1"].shape[1]
    D = params["w2"].shape[1]

    Fp = _round_up(F, LANE)
    Hp = _round_up(H, LANE)
    Dp = _round_up(D, LANE)
    block_b = max(8, _round_up(min(block_b, _round_up(B, 8)), 8))
    Bp = _round_up(B, block_b)

    # ---- pad + pack operands (bf16 weights/x, f32 per-layer param packs) ----
    xp = jnp.zeros((Bp, Fp), jnp.float32).at[:B, :F].set(
        x.astype(jnp.float32)).astype(jnp.bfloat16)
    w1 = jnp.zeros((Fp, Hp), jnp.float32).at[:F, :H].set(
        params["w1"].astype(jnp.float32)).astype(jnp.bfloat16)
    w2 = jnp.zeros((Hp, Dp), jnp.float32).at[:H, :D].set(
        params["w2"].astype(jnp.float32)).astype(jnp.bfloat16)
    p1 = (jnp.zeros((8, Hp), jnp.float32)
          .at[0, :H].set(params["b1"])
          .at[1, :H].set(params["g1"])
          .at[2, :H].set(params["be1"]))
    p2 = (jnp.zeros((8, Dp), jnp.float32)
          .at[0, :D].set(params["b2"])
          .at[1, :D].set(params["g2"])
          .at[2, :D].set(params["be2"]))

    grid = (Bp // block_b,)
    kernel = functools.partial(net_ln2_kernel, n_hidden=H, n_out=D)

    # Scheduler / VMEM hints.
    flops = 2 * Bp * (Fp * Hp + Hp * Dp)
    bytes_accessed = ((xp.size + w1.size + w2.size) * 2
                      + (p1.size + p2.size) * 4 + Bp * Dp * 4)
    cost = pl.CostEstimate(flops=flops, transcendentals=2 * Bp,
                           bytes_accessed=bytes_accessed)

    bytes_weights = (w1.size + w2.size) * 2 + (p1.size + p2.size) * 4
    bytes_io = 2 * (block_b * Fp * 2 + block_b * Dp * 4)   # double-buffered tiles
    bytes_act = 8 * block_b * (Hp + Dp) * 4                # temporaries headroom
    vmem_limit = int(min(max(2 * bytes_weights + bytes_io + bytes_act, 8 << 20),
                         56 << 20))                        # fits v7x's 64 MiB too

    def _weight_map(i):
        return (0, 0)

    def run(single_buffer_weights):
        if single_buffer_weights:
            def wspec(shape):
                return pl.BlockSpec(shape, _weight_map,
                                    pipeline_mode=pl.Buffered(1))
        else:
            def wspec(shape):
                return pl.BlockSpec(shape, _weight_map)
        call = pl.pallas_call(
            kernel,
            out_shape=jax.ShapeDtypeStruct((Bp, Dp), jnp.float32),
            grid_spec=pltpu.PrefetchScalarGridSpec(
                num_scalar_prefetch=0,
                grid=grid,
                in_specs=[
                    pl.BlockSpec((block_b, Fp), lambda i: (i, 0)),  # x tile
                    wspec((Fp, Hp)),                                # w1 (full)
                    wspec((8, Hp)),                                 # b1/g1/be1 pack
                    wspec((Hp, Dp)),                                # w2 (full)
                    wspec((8, Dp)),                                 # b2/g2/be2 pack
                ],
                out_specs=pl.BlockSpec((block_b, Dp), lambda i: (i, 0)),
            ),
            compiler_params=pltpu.CompilerParams(
                dimension_semantics=("parallel",),
                vmem_limit_bytes=vmem_limit,
            ),
            cost_estimate=cost,
        )
        return call(xp, w1, p1, w2, p2)

    try:
        out = run(True)
    except Exception:
        # TODO(synk): pl.Buffered(1) single-buffering unsupported on this JAX
        # build; fall back to default double-buffered grid-invariant weights.
        out = run(False)

    return out[:B, :D]


def init_params(key, n_feature, n_hidden, bottleneck_dim):
    """Deterministic synthetic init matching the module's parameter shapes.

    fc1: PyTorch default uniform init; fc2: xavier_normal + zero bias
    (init_weights is applied to fc2 only); LayerNorms: weight=1, bias=0.
    """
    k1, k2, k3 = jax.random.split(key, 3)
    bound1 = 1.0 / jnp.sqrt(n_feature)
    w1 = jax.random.uniform(k1, (n_feature, n_hidden), jnp.float32,
                            minval=-bound1, maxval=bound1)
    b1 = jax.random.uniform(k2, (n_hidden,), jnp.float32,
                            minval=-bound1, maxval=bound1)
    std2 = jnp.sqrt(2.0 / (n_hidden + bottleneck_dim))
    w2 = std2 * jax.random.normal(k3, (n_hidden, bottleneck_dim), jnp.float32)
    b2 = jnp.zeros((bottleneck_dim,), jnp.float32)
    return dict(
        w1=w1, b1=b1,
        g1=jnp.ones((n_hidden,), jnp.float32),
        be1=jnp.zeros((n_hidden,), jnp.float32),
        w2=w2, b2=b2,
        g2=jnp.ones((bottleneck_dim,), jnp.float32),
        be2=jnp.zeros((bottleneck_dim,), jnp.float32),
    )


def reference_forward(x, p):
    """Plain-JAX f32 reference of Net_ln2.forward for validation."""
    def ln(h, g, b):
        mu = jnp.mean(h, axis=-1, keepdims=True)
        var = jnp.mean((h - mu) ** 2, axis=-1, keepdims=True)
        return (h - mu) / jnp.sqrt(var + LN_EPS) * g + b

    h = x @ p["w1"] + p["b1"]
    h = jnp.maximum(ln(h, p["g1"], p["be1"]), 0.0)
    z = h @ p["w2"] + p["b2"]
    z = jnp.maximum(ln(z, p["g2"], p["be2"]), 0.0)
    return z.reshape(z.shape[0], -1)


if __name__ == "__main__":
    # Small shapes consistent with (n_feature, n_hidden, bottleneck_dim).
    B, n_feature, n_hidden, bottleneck_dim = 16, 32, 64, 32

    key = jax.random.PRNGKey(0)
    kx, kp = jax.random.split(key)
    x = jax.random.normal(kx, (B, n_feature), jnp.float32)
    params = init_params(kp, n_feature, n_hidden, bottleneck_dim)

    # block_b=8 -> 2 grid steps even at this tiny batch (pipelining / dual-TC);
    # default block_b=128 is the production tile for large batches.
    out = net_ln2_forward(x, params, block_b=8)
    out = jax.block_until_ready(out)

    ref = reference_forward(x, params)
    assert out.shape == (B, bottleneck_dim)
    # bf16 matmul operands (f32 accumulation / f32 LayerNorm) vs pure-f32 ref.
    assert jnp.allclose(out, ref, atol=5e-2, rtol=5e-2), "mismatch vs reference"

    print("KERNEL_OK")
</pallas_src>

<mosaic_0001>
module attributes {stable_mosaic.version = 11 : i64} {
  func.func @net_ln2_kernel(%arg0: i32, %arg1: memref<8x128xbf16, #tpu.memory_space<vmem>>, %arg2: memref<128x128xbf16, #tpu.memory_space<vmem>>, %arg3: memref<8x128xf32, #tpu.memory_space<vmem>>, %arg4: memref<128x128xbf16, #tpu.memory_space<vmem>>, %arg5: memref<8x128xf32, #tpu.memory_space<vmem>>, %arg6: memref<8x128xf32, #tpu.memory_space<vmem>>) attributes {dimension_semantics = [#tpu.dimension_semantics<parallel>], iteration_bounds = array<i64: 2>, scalar_prefetch = 0 : i64, scratch_operands = 0 : i64, tpu.core_type = #tpu.core_type<tc>, window_params = [{transform_indices = @transform_0, window_bounds = array<i64: 8, 128>}, {pipeline_mode = #tpu.pipeline_mode<synchronous>, transform_indices = @transform_1, window_bounds = array<i64: 128, 128>}, {pipeline_mode = #tpu.pipeline_mode<synchronous>, transform_indices = @transform_2, window_bounds = array<i64: 8, 128>}, {pipeline_mode = #tpu.pipeline_mode<synchronous>, transform_indices = @transform_3, window_bounds = array<i64: 128, 128>}, {pipeline_mode = #tpu.pipeline_mode<synchronous>, transform_indices = @transform_4, window_bounds = array<i64: 8, 128>}, {transform_indices = @transform_5, window_bounds = array<i64: 8, 128>}]} {
    %c0 = arith.constant 0 : index
    %c0_0 = arith.constant 0 : index
    %0 = vector.load %arg1[%c0, %c0_0] : memref<8x128xbf16, #tpu.memory_space<vmem>>, vector<8x128xbf16>
    %c0_1 = arith.constant 0 : index
    %c0_2 = arith.constant 0 : index
    %1 = vector.load %arg2[%c0_1, %c0_2] : memref<128x128xbf16, #tpu.memory_space<vmem>>, vector<128x128xbf16>
    %cst = arith.constant dense<0.000000e+00> : vector<8x128xf32>
    %2 = tpu.matmul %0, %1, %cst {dimension_numbers = #tpu.dot_dimension_numbers<[1], [0], [0], [1], [0, 0, 1, 1], [], []>} : vector<8x128xbf16>, vector<128x128xbf16>, vector<8x128xf32> -> vector<8x128xf32>
    %c0_3 = arith.constant 0 : index
    %c0_4 = arith.constant 0 : index
    %3 = vector.load %arg3[%c0_3, %c0_4] : memref<8x128xf32, #tpu.memory_space<vmem>>, vector<8x128xf32>
    %4 = vector.extract_strided_slice %3 {offsets = [0, 0], sizes = [1, 128], strides = [1, 1]} : vector<8x128xf32> to vector<1x128xf32>
    %5 = vector.broadcast %4 : vector<1x128xf32> to vector<8x128xf32>
    %6 = arith.addf %2, %5 : vector<8x128xf32>
    %7 = vector.extract_strided_slice %3 {offsets = [1, 0], sizes = [1, 128], strides = [1, 1]} : vector<8x128xf32> to vector<1x128xf32>
    %8 = vector.extract_strided_slice %3 {offsets = [2, 0], sizes = [1, 128], strides = [1, 1]} : vector<8x128xf32> to vector<1x128xf32>
    %9 = tpu.iota {dimensions = array<i32: 1>} : vector<1x128xi32>
    %c64_i32 = arith.constant 64 : i32
    %10 = vector.broadcast %c64_i32 : i32 to vector<1x128xi32>
    %11 = arith.cmpi slt, %9, %10 : vector<1x128xi32>
    %12 = arith.extui %11 : vector<1x128xi1> to vector<1x128xi32>
    %13 = arith.sitofp %12 : vector<1x128xi32> to vector<1x128xf32>
    %cst_5 = arith.constant dense<0.000000e+00> : vector<8xf32>
    %14 = vector.multi_reduction <add>, %6, %cst_5 [1] : vector<8x128xf32> to vector<8xf32>
    %15 = vector.shape_cast %14 : vector<8xf32> to vector<8x1xf32>
    %cst_6 = arith.constant 1.562500e-02 : f32
    %16 = vector.broadcast %cst_6 : f32 to vector<8x1xf32>
    %17 = arith.mulf %15, %16 : vector<8x1xf32>
    %18 = vector.broadcast %17 : vector<8x1xf32> to vector<8x128xf32>
    %19 = arith.subf %6, %18 : vector<8x128xf32>
    %20 = vector.broadcast %13 : vector<1x128xf32> to vector<8x128xf32>
    %21 = arith.mulf %19, %20 : vector<8x128xf32>
    %22 = arith.mulf %21, %21 : vector<8x128xf32>
    %cst_7 = arith.constant dense<0.000000e+00> : vector<8xf32>
    %23 = vector.multi_reduction <add>, %22, %cst_7 [1] : vector<8x128xf32> to vector<8xf32>
    %24 = vector.shape_cast %23 : vector<8xf32> to vector<8x1xf32>
    %cst_8 = arith.constant 1.562500e-02 : f32
    %25 = vector.broadcast %cst_8 : f32 to vector<8x1xf32>
    %26 = arith.mulf %24, %25 : vector<8x1xf32>
    %cst_9 = arith.constant 9.99999974E-6 : f32
    %27 = vector.broadcast %cst_9 : f32 to vector<8x1xf32>
    %28 = arith.addf %26, %27 : vector<8x1xf32>
    %29 = math.rsqrt %28 : vector<8x1xf32>
    %30 = vector.broadcast %29 : vector<8x1xf32> to vector<8x128xf32>
    %31 = arith.mulf %21, %30 : vector<8x128xf32>
    %32 = vector.broadcast %7 : vector<1x128xf32> to vector<8x128xf32>
    %33 = arith.mulf %31, %32 : vector<8x128xf32>
    %34 = vector.broadcast %8 : vector<1x128xf32> to vector<8x128xf32>
    %35 = arith.addf %33, %34 : vector<8x128xf32>
    %cst_10 = arith.constant 0.000000e+00 : f32
    %36 = vector.broadcast %cst_10 : f32 to vector<8x128xf32>
    %37 = arith.maximumf %35, %36 : vector<8x128xf32>
    %38 = arith.truncf %37 : vector<8x128xf32> to vector<8x128xbf16>
    %c0_11 = arith.constant 0 : index
    %c0_12 = arith.constant 0 : index
    %39 = vector.load %arg4[%c0_11, %c0_12] : memref<128x128xbf16, #tpu.memory_space<vmem>>, vector<128x128xbf16>
    %cst_13 = arith.constant dense<0.000000e+00> : vector<8x128xf32>
    %40 = tpu.matmul %38, %39, %cst_13 {dimension_numbers = #tpu.dot_dimension_numbers<[1], [0], [0], [1], [0, 0, 1, 1], [], []>} : vector<8x128xbf16>, vector<128x128xbf16>, vector<8x128xf32> -> vector<8x128xf32>
    %c0_14 = arith.constant 0 : index
    %c0_15 = arith.constant 0 : index
    %41 = vector.load %arg5[%c0_14, %c0_15] : memref<8x128xf32, #tpu.memory_space<vmem>>, vector<8x128xf32>
    %42 = vector.extract_strided_slice %41 {offsets = [0, 0], sizes = [1, 128], strides = [1, 1]} : vector<8x128xf32> to vector<1x128xf32>
    %43 = vector.broadcast %42 : vector<1x128xf32> to vector<8x128xf32>
    %44 = arith.addf %40, %43 : vector<8x128xf32>
    %45 = vector.extract_strided_slice %41 {offsets = [1, 0], sizes = [1, 128], strides = [1, 1]} : vector<8x128xf32> to vector<1x128xf32>
    %46 = vector.extract_strided_slice %41 {offsets = [2, 0], sizes = [1, 128], strides = [1, 1]} : vector<8x128xf32> to vector<1x128xf32>
    %47 = tpu.iota {dimensions = array<i32: 1>} : vector<1x128xi32>
    %c32_i32 = arith.constant 32 : i32
    %48 = vector.broadcast %c32_i32 : i32 to vector<1x128xi32>
    %49 = arith.cmpi slt, %47, %48 : vector<1x128xi32>
    %50 = arith.extui %49 : vector<1x128xi1> to vector<1x128xi32>
    %51 = arith.sitofp %50 : vector<1x128xi32> to vector<1x128xf32>
    %cst_16 = arith.constant dense<0.000000e+00> : vector<8xf32>
    %52 = vector.multi_reduction <add>, %44, %cst_16 [1] : vector<8x128xf32> to vector<8xf32>
    %53 = vector.shape_cast %52 : vector<8xf32> to vector<8x1xf32>
    %cst_17 = arith.constant 3.125000e-02 : f32
    %54 = vector.broadcast %cst_17 : f32 to vector<8x1xf32>
    %55 = arith.mulf %53, %54 : vector<8x1xf32>
    %56 = vector.broadcast %55 : vector<8x1xf32> to vector<8x128xf32>
    %57 = arith.subf %44, %56 : vector<8x128xf32>
    %58 = vector.broadcast %51 : vector<1x128xf32> to vector<8x128xf32>
    %59 = arith.mulf %57, %58 : vector<8x128xf32>
    %60 = arith.mulf %59, %59 : vector<8x128xf32>
    %cst_18 = arith.constant dense<0.000000e+00> : vector<8xf32>
    %61 = vector.multi_reduction <add>, %60, %cst_18 [1] : vector<8x128xf32> to vector<8xf32>
    %62 = vector.shape_cast %61 : vector<8xf32> to vector<8x1xf32>
    %cst_19 = arith.constant 3.125000e-02 : f32
    %63 = vector.broadcast %cst_19 : f32 to vector<8x1xf32>
    %64 = arith.mulf %62, %63 : vector<8x1xf32>
    %cst_20 = arith.constant 9.99999974E-6 : f32
    %65 = vector.broadcast %cst_20 : f32 to vector<8x1xf32>
    %66 = arith.addf %64, %65 : vector<8x1xf32>
    %67 = math.rsqrt %66 : vector<8x1xf32>
    %68 = vector.broadcast %67 : vector<8x1xf32> to vector<8x128xf32>
    %69 = arith.mulf %59, %68 : vector<8x128xf32>
    %70 = vector.broadcast %45 : vector<1x128xf32> to vector<8x128xf32>
    %71 = arith.mulf %69, %70 : vector<8x128xf32>
    %72 = vector.broadcast %46 : vector<1x128xf32> to vector<8x128xf32>
    %73 = arith.addf %71, %72 : vector<8x128xf32>
    %cst_21 = arith.constant 0.000000e+00 : f32
    %74 = vector.broadcast %cst_21 : f32 to vector<8x128xf32>
    %75 = arith.maximumf %73, %74 : vector<8x128xf32>
    %c0_22 = arith.constant 0 : index
    %c0_23 = arith.constant 0 : index
    %76 = vector.load %arg6[%c0_22, %c0_23] : memref<8x128xf32, #tpu.memory_space<vmem>>, vector<8x128xf32>
    tpu.vector_store %arg6[%c0_22, %c0_23], %75 {strides = array<i32>} : memref<8x128xf32, #tpu.memory_space<vmem>>, vector<8x128xf32>,
    return
  }
  func.func @transform_0(%arg0: i32) -> (i32, i32) {
    %c0_i32 = arith.constant 0 : i32
    %c0_i32_0 = arith.constant 0 : i32
    return %arg0, %c0_i32 : i32, i32
  }
  func.func @transform_1(%arg0: i32) -> (i32, i32) {
    %c0_i32 = arith.constant 0 : i32
    %c0_i32_0 = arith.constant 0 : i32
    %c0_i32_1 = arith.constant 0 : i32
    return %c0_i32, %c0_i32_0 : i32, i32
  }
  func.func @transform_2(%arg0: i32) -> (i32, i32) {
    %c0_i32 = arith.constant 0 : i32
    %c0_i32_0 = arith.constant 0 : i32
    %c0_i32_1 = arith.constant 0 : i32
    return %c0_i32, %c0_i32_0 : i32, i32
  }
  func.func @transform_3(%arg0: i32) -> (i32, i32) {
    %c0_i32 = arith.constant 0 : i32
    %c0_i32_0 = arith.constant 0 : i32
    %c0_i32_1 = arith.constant 0 : i32
    return %c0_i32, %c0_i32_0 : i32, i32
  }
  func.func @transform_4(%arg0: i32) -> (i32, i32) {
    %c0_i32 = arith.constant 0 : i32
    %c0_i32_0 = arith.constant 0 : i32
    %c0_i32_1 = arith.constant 0 : i32
    return %c0_i32, %c0_i32_0 : i32, i32
  }
  func.func @transform_5(%arg0: i32) -> (i32, i32) {
    %c0_i32 = arith.constant 0 : i32
    %c0_i32_0 = arith.constant 0 : i32
    return %arg0, %c0_i32 : i32, i32
  }
}

module attributes {stable_mosaic.version = 11 : i64} {
  func.func @net_ln2_kernel(%arg0: i32, %arg1: memref<8x128xbf16, #tpu.memory_space<vmem>>, %arg2: memref<128x128xbf16, #tpu.memory_space<vmem>>, %arg3: memref<8x128xf32, #tpu.memory_space<vmem>>, %arg4: memref<128x128xbf16, #tpu.memory_space<vmem>>, %arg5: memref<8x128xf32, #tpu.memory_space<vmem>>, %arg6: memref<8x128xf32, #tpu.memory_space<vmem>>) attributes {dimension_semantics = [#tpu.dimension_semantics<parallel>], iteration_bounds = array<i64: 2>, scalar_prefetch = 0 : i64, scratch_operands = 0 : i64, tpu.core_type = #tpu.core_type<tc>, window_params = [{transform_indices = @transform_0, window_bounds = array<i64: 8, 128>}, {pipeline_mode = #tpu.pipeline_mode<synchronous>, transform_indices = @transform_1, window_bounds = array<i64: 128, 128>}, {pipeline_mode = #tpu.pipeline_mode<synchronous>, transform_indices = @transform_2, window_bounds = array<i64: 8, 128>}, {pipeline_mode = #tpu.pipeline_mode<synchronous>, transform_indices = @transform_3, window_bounds = array<i64: 128, 128>}, {pipeline_mode = #tpu.pipeline_mode<synchronous>, transform_indices = @transform_4, window_bounds = array<i64: 8, 128>}, {transform_indices = @transform_5, window_bounds = array<i64: 8, 128>}]} {
    %c0 = arith.constant 0 : index
    %c0_0 = arith.constant 0 : index
    %0 = vector.load %arg1[%c0, %c0_0] : memref<8x128xbf16, #tpu.memory_space<vmem>>, vector<8x128xbf16>
    %c0_1 = arith.constant 0 : index
    %c0_2 = arith.constant 0 : index
    %1 = vector.load %arg2[%c0_1, %c0_2] : memref<128x128xbf16, #tpu.memory_space<vmem>>, vector<128x128xbf16>
    %cst = arith.constant dense<0.000000e+00> : vector<8x128xf32>
    %2 = tpu.matmul %0, %1, %cst {dimension_numbers = #tpu.dot_dimension_numbers<[1], [0], [0], [1], [0, 0, 1, 1], [], []>} : vector<8x128xbf16>, vector<128x128xbf16>, vector<8x128xf32> -> vector<8x128xf32>
    %c0_3 = arith.constant 0 : index
    %c0_4 = arith.constant 0 : index
    %3 = vector.load %arg3[%c0_3, %c0_4] : memref<8x128xf32, #tpu.memory_space<vmem>>, vector<8x128xf32>
    %4 = vector.extract_strided_slice %3 {offsets = [0, 0], sizes = [1, 128], strides = [1, 1]} : vector<8x128xf32> to vector<1x128xf32>
    %5 = vector.broadcast %4 : vector<1x128xf32> to vector<8x128xf32>
    %6 = arith.addf %2, %5 : vector<8x128xf32>
    %7 = vector.extract_strided_slice %3 {offsets = [1, 0], sizes = [1, 128], strides = [1, 1]} : vector<8x128xf32> to vector<1x128xf32>
    %8 = vector.extract_strided_slice %3 {offsets = [2, 0], sizes = [1, 128], strides = [1, 1]} : vector<8x128xf32> to vector<1x128xf32>
    %9 = tpu.iota {dimensions = array<i32: 1>} : vector<1x128xi32>
    %c64_i32 = arith.constant 64 : i32
    %10 = vector.broadcast %c64_i32 : i32 to vector<1x128xi32>
    %11 = arith.cmpi slt, %9, %10 : vector<1x128xi32>
    %12 = arith.extui %11 : vector<1x128xi1> to vector<1x128xi32>
    %13 = arith.sitofp %12 : vector<1x128xi32> to vector<1x128xf32>
    %cst_5 = arith.constant dense<0.000000e+00> : vector<8xf32>
    %14 = vector.multi_reduction <add>, %6, %cst_5 [1] : vector<8x128xf32> to vector<8xf32>
    %15 = vector.shape_cast %14 : vector<8xf32> to vector<8x1xf32>
    %cst_6 = arith.constant 1.562500e-02 : f32
    %16 = vector.broadcast %cst_6 : f32 to vector<8x1xf32>
    %17 = arith.mulf %15, %16 : vector<8x1xf32>
    %18 = vector.broadcast %17 : vector<8x1xf32> to vector<8x128xf32>
    %19 = arith.subf %6, %18 : vector<8x128xf32>
    %20 = vector.broadcast %13 : vector<1x128xf32> to vector<8x128xf32>
    %21 = arith.mulf %19, %20 : vector<8x128xf32>
    %22 = arith.mulf %21, %21 : vector<8x128xf32>
    %cst_7 = arith.constant dense<0.000000e+00> : vector<8xf32>
    %23 = vector.multi_reduction <add>, %22, %cst_7 [1] : vector<8x128xf32> to vector<8xf32>
    %24 = vector.shape_cast %23 : vector<8xf32> to vector<8x1xf32>
    %cst_8 = arith.constant 1.562500e-02 : f32
    %25 = vector.broadcast %cst_8 : f32 to vector<8x1xf32>
    %26 = arith.mulf %24, %25 : vector<8x1xf32>
    %cst_9 = arith.constant 9.99999974E-6 : f32
    %27 = vector.broadcast %cst_9 : f32 to vector<8x1xf32>
    %28 = arith.addf %26, %27 : vector<8x1xf32>
    %29 = math.rsqrt %28 : vector<8x1xf32>
    %30 = vector.broadcast %29 : vector<8x1xf32> to vector<8x128xf32>
    %31 = arith.mulf %21, %30 : vector<8x128xf32>
    %32 = vector.broadcast %7 : vector<1x128xf32> to vector<8x128xf32>
    %33 = arith.mulf %31, %32 : vector<8x128xf32>
    %34 = vector.broadcast %8 : vector<1x128xf32> to vector<8x128xf32>
    %35 = arith.addf %33, %34 : vector<8x128xf32>
    %cst_10 = arith.constant 0.000000e+00 : f32
    %36 = vector.broadcast %cst_10 : f32 to vector<8x128xf32>
    %37 = arith.maximumf %35, %36 : vector<8x128xf32>
    %38 = arith.truncf %37 : vector<8x128xf32> to vector<8x128xbf16>
    %c0_11 = arith.constant 0 : index
    %c0_12 = arith.constant 0 : index
    %39 = vector.load %arg4[%c0_11, %c0_12] : memref<128x128xbf16, #tpu.memory_space<vmem>>, vector<128x128xbf16>
    %cst_13 = arith.constant dense<0.000000e+00> : vector<8x128xf32>
    %40 = tpu.matmul %38, %39, %cst_13 {dimension_numbers = #tpu.dot_dimension_numbers<[1], [0], [0], [1], [0, 0, 1, 1], [], []>} : vector<8x128xbf16>, vector<128x128xbf16>, vector<8x128xf32> -> vector<8x128xf32>
    %c0_14 = arith.constant 0 : index
    %c0_15 = arith.constant 0 : index
    %41 = vector.load %arg5[%c0_14, %c0_15] : memref<8x128xf32, #tpu.memory_space<vmem>>, vector<8x128xf32>
    %42 = vector.extract_strided_slice %41 {offsets = [0, 0], sizes = [1, 128], strides = [1, 1]} : vector<8x128xf32> to vector<1x128xf32>
    %43 = vector.broadcast %42 : vector<1x128xf32> to vector<8x128xf32>
    %44 = arith.addf %40, %43 : vector<8x128xf32>
    %45 = vector.extract_strided_slice %41 {offsets = [1, 0], sizes = [1, 128], strides = [1, 1]} : vector<8x128xf32> to vector<1x128xf32>
    %46 = vector.extract_strided_slice %41 {offsets = [2, 0], sizes = [1, 128], strides = [1, 1]} : vector<8x128xf32> to vector<1x128xf32>
    %47 = tpu.iota {dimensions = array<i32: 1>} : vector<1x128xi32>
    %c32_i32 = arith.constant 32 : i32
    %48 = vector.broadcast %c32_i32 : i32 to vector<1x128xi32>
    %49 = arith.cmpi slt, %47, %48 : vector<1x128xi32>
    %50 = arith.extui %49 : vector<1x128xi1> to vector<1x128xi32>
    %51 = arith.sitofp %50 : vector<1x128xi32> to vector<1x128xf32>
    %cst_16 = arith.constant dense<0.000000e+00> : vector<8xf32>
    %52 = vector.multi_reduction <add>, %44, %cst_16 [1] : vector<8x128xf32> to vector<8xf32>
    %53 = vector.shape_cast %52 : vector<8xf32> to vector<8x1xf32>
    %cst_17 = arith.constant 3.125000e-02 : f32
    %54 = vector.broadcast %cst_17 : f32 to vector<8x1xf32>
    %55 = arith.mulf %53, %54 : vector<8x1xf32>
    %56 = vector.broadcast %55 : vector<8x1xf32> to vector<8x128xf32>
    %57 = arith.subf %44, %56 : vector<8x128xf32>
    %58 = vector.broadcast %51 : vector<1x128xf32> to vector<8x128xf32>
    %59 = arith.mulf %57, %58 : vector<8x128xf32>
    %60 = arith.mulf %59, %59 : vector<8x128xf32>
    %cst_18 = arith.constant dense<0.000000e+00> : vector<8xf32>
    %61 = vector.multi_reduction <add>, %60, %cst_18 [1] : vector<8x128xf32> to vector<8xf32>
    %62 = vector.shape_cast %61 : vector<8xf32> to vector<8x1xf32>
    %cst_19 = arith.constant 3.125000e-02 : f32
    %63 = vector.broadcast %cst_19 : f32 to vector<8x1xf32>
    %64 = arith.mulf %62, %63 : vector<8x1xf32>
    %cst_20 = arith.constant 9.99999974E-6 : f32
    %65 = vector.broadcast %cst_20 : f32 to vector<8x1xf32>
    %66 = arith.addf %64, %65 : vector<8x1xf32>
    %67 = math.rsqrt %66 : vector<8x1xf32>
    %68 = vector.broadcast %67 : vector<8x1xf32> to vector<8x128xf32>
    %69 = arith.mulf %59, %68 : vector<8x128xf32>
    %70 = vector.broadcast %45 : vector<1x128xf32> to vector<8x128xf32>
    %71 = arith.mulf %69, %70 : vector<8x128xf32>
    %72 = vector.broadcast %46 : vector<1x128xf32> to vector<8x128xf32>
    %73 = arith.addf %71, %72 : vector<8x128xf32>
    %cst_21 = arith.constant 0.000000e+00 : f32
    %74 = vector.broadcast %cst_21 : f32 to vector<8x128xf32>
    %75 = arith.maximumf %73, %74 : vector<8x128xf32>
    %c0_22 = arith.constant 0 : index
    %c0_23 = arith.constant 0 : index
    %76 = vector.load %arg6[%c0_22, %c0_23] : memref<8x128xf32, #tpu.memory_space<vmem>>, vector<8x128xf32>
    tpu.vector_store %arg6[%c0_22, %c0_23], %75 {strides = array<i32>} : memref<8x128xf32, #tpu.memory_space<vmem>>, vector<8x128xf32>,
    return
  }
  func.func @transform_0(%arg0: i32) -> (i32, i32) {
    %c0_i32 = arith.constant 0 : i32
    %c0_i32_0 = arith.constant 0 : i32
    return %arg0, %c0_i32 : i32, i32
  }
  func.func @transform_1(%arg0: i32) -> (i32, i32) {
    %c0_i32 = arith.constant 0 : i32
    %c0_i32_0 = arith.constant 0 : i32
    %c0_i32_1 = arith.constant 0 : i32
    return %c0_i32, %c0_i32_0 : i32, i32
  }
  func.func @transform_2(%arg0: i32) -> (i32, i32) {
    %c0_i32 = arith.constant 0 : i32
    %c0_i32_0 = arith.constant 0 : i32
    %c0_i32_1 = arith.constant 0 : i32
    return %c0_i32, %c0_i32_0 : i32, i32
  }
  func.func @transform_3(%arg0: i32) -> (i32, i32) {
    %c0_i32 = arith.constant 0 : i32
    %c0_i32_0 = arith.constant 0 : i32
    %c0_i32_1 = arith.constant 0 : i32
    return %c0_i32, %c0_i32_0 : i32, i32
  }
  func.func @transform_4(%arg0: i32) -> (i32, i32) {
    %c0_i32 = arith.constant 0 : i32
    %c0_i32_0 = arith.constant 0 : i32
    %c0_i32_1 = arith.constant 0 : i32
    return %c0_i32, %c0_i32_0 : i32, i32
  }
  func.func @transform_5(%arg0: i32) -> (i32, i32) {
    %c0_i32 = arith.constant 0 : i32
    %c0_i32_0 = arith.constant 0 : i32
    return %arg0, %c0_i32 : i32, i32
  }
}

</mosaic_0001>

<bundles_post_ra>
// kernel: tpu_custom_call.1
= control target key start
LH: loop header
LB: loop body
LE: loop exit
PB: predicated region body
PF: predicated region fallthrough
CT: control target
= control target key end

     0   :  { %10 = vsyncpa [#allocation3], 0  ;;  %s1276_s0 = inlined_call_operand.hbm [shape: bf16[16,128], index: 0, kind: input, shape index: {}]   ;;  %s1277_s1 = inlined_call_operand.hbm [shape: bf16[128,128], index: 1, kind: input, shape index: {}]   ;;  %s1278_s2 = inlined_call_operand.hbm [shape: f32[8,128], index: 2, kind: input, shape index: {}]   ;;  %s1279_s3 = inlined_call_operand.hbm [shape: bf16[128,128], index: 3, kind: input, shape index: {}]   ;;  %s1280_s4 = inlined_call_operand.hbm [shape: f32[8,128], index: 4, kind: input, shape index: {}]   ;;  %s1281_s5 = inlined_call_operand.hbm [shape: f32[16,128], index: 5, kind: output, shape index: {}]  }
   0x1   :  { %12 = vsyncpa [#allocation3 + $0x1], 0 }
   0x2   :  { %13 = vsyncpa [#allocation6], 0 }
   0x3   :  { %14 = vsyncpa [#allocation9], 0 }
   0x4   :  { %15 = vsyncpa [#allocation4], 0 }
   0x5   :  { %17 = vsyncpa [#allocation4 + $0x1], 0  ;;  %s1108_s18 = smov 0   ;;  %s1110_s19 = smov 0  }
   0x6   :  { %s1112_s20 = smov 0   ;;  %s1114_s21 = smov 0  }
   0x7 LB: > { %s175_s24 = sshll.u32 %s1277_s1, 4  ;;  %s1132_s25 = sadd.s32 4294967295, %s1069_s21   ;;  %s1069_s21 = sphi %s1114_s21, %s1293_s21   ;;  %s1065_s20 = sphi %s1112_s20, %s1292_s20   ;;  %s1061_s19 = sphi %s1110_s19, %s1291_s19   ;;  %s1057_s18 = sphi %s1108_s18, %s1290_s18   ;;  %s176_s24 = int_to_ptr.hbm [resolvable:$true] %s175_s24 }
   0x8   : > { %p650_p0 = scmp.ge.s32.totalorder %s1069_s21, 1  ;;  %p44_p1 = scmp.eq.s32.totalorder %s1132_s25, 0 }
   0x9   : > { %p164_p2 = scmp.lt.s32.totalorder %s1069_s21, 3  ;;  %s1071_s27 = smov [#allocation5]  }
   0xa   : > { %s177_s28 = sshll.u32 %s1071_s27, 4  ;;  %s201_s6 = sshll.u32 %s1279_s3, 4  ;;  %s178_s28 = int_to_ptr.vmem [resolvable:$true] %s177_s28  ;;  %s202_s6 = int_to_ptr.hbm [resolvable:$true] %s201_s6 }
   0xb   : > { %p1137_p3 = pnand %p650_p0, %p164_p2  ;;  %s190_s10 = sshll.u32 %s1278_s2, 4  ;;  %s191_s10 = int_to_ptr.hbm [resolvable:$true] %s190_s10 }
   0xc   : > { %s1072_s11 = smov [#allocation8]   ;;  %s1073_s13 = smov 64  }
   0xd   : > { %p771_p4 = pneg %p1137_p3  ;;  %s203_s12 = sshll.u32 %s1072_s11, 4  ;;  %s204_s12 = int_to_ptr.vmem [resolvable:$true] %s203_s12 }
   0xe   : > { %s1074_s14 = smov 4   ;;  %s216_s17 = sshll.u32 %s1280_s4, 4  ;;  %s217_s17 = int_to_ptr.hbm [resolvable:$true] %s216_s17 }
   0xf   : > { %p1149_p6 = pnand %p771_p4, %p44_p1  ;;  %s1075_s22 = smov [#allocation7]  }
  0x10   : > { %s192_s23 = sshll.u32 %s1075_s22, 4  ;;  %s1169_s29 = sadd.s32 1, %s1069_s21   ;;  %s193_s23 = int_to_ptr.vmem [resolvable:$true] %s192_s23 }
  0x11   : > { %774 = dma.hbm_to_vmem [thread:$0]  (!%p1149_p6), %s176_s24, 1024, %s178_s28, [#allocation6], %s1073_s13, %s1073_s13, %s1074_s14  }
  0x12   : > { %780 = dma.hbm_to_vmem [thread:$0]  (!%p1149_p6), %s202_s6, 1024, %s204_s12, [#allocation9], %s1073_s13, %s1073_s13, %s1074_s14  }
  0x13   : > { %777 = dma.hbm_to_vmem [thread:$0]  (!%p1149_p6), %s191_s10, 128, %s193_s23, [#allocation6]  }
  0x14   : > { %s1076_s24 = smov [#allocation10]   ;;  %s649_s28 = sadd.s32 4294967294, %s1069_s21  }
  0x15   : > { %s218_s27 = sshll.u32 %s1076_s24, 4  ;;  %s27_s30 = ssub.s32 %s1069_s21, %s1169_s29  ;;  %s219_s27 = int_to_ptr.vmem [resolvable:$true] %s218_s27 }
  0x16   : > { %783 = dma.hbm_to_vmem [thread:$0]  (!%p1149_p6), %s217_s17, 128, %s219_s27, [#allocation9]  }
  0x17   : > { %s30_s6 = sadd.s32 1, %s1065_s20  ;;  %p28_p7 = scmp.eq.s32.totalorder %s27_s30, 0 }
  0x18   : > { %p37_p8 = scmp.ne.s32.totalorder %s1065_s20, %s1061_s19  ;;  %p38_p9 = scmp.eq.s32.totalorder %s1069_s21, 0 }
  0x19   : > { %p43_p10 = scmp.ne.s32.totalorder %s1061_s19, %s1057_s18  ;;  %p151_p13 = scmp.eq.s32.totalorder %s1132_s25, 1 }
  0x1a   : > { %s1180_s8 = scalar_select %p28_p7, %s1065_s20, %s30_s6  }
  0x1b   : > { %p1182_p11 = por %p38_p9, %p37_p8  ;;  %p1188_p12 = por %p44_p1, %p43_p10 }
  0x1c   : > { %p157_p0 = scmp.eq.s32.totalorder %s649_s28, 1  ;;  %p796_p2 = scmp.lt.s32.totalorder %s1069_s21, 2 }
  0x1d   : > { %s229_s10 = sand.u32 1, %s1065_s20   ;;  %p1195_p4 = por %p151_p13, %p37_p8 }
  0x1e   : > { %p1199_p6 = por %p157_p0, %p43_p10  ;;  %s656_s13 = sshll.u32 %s229_s10, 2 }
  0x1f   : > { %s657_s14 = sshll.u32 %s1069_s21, 2  ;;  %s233_s22 = scalar_lea.vmem [#allocation2], %s656_s13 }
  0x20   : > { %s237_s17 = scalar_lea.hbm %s1276_s0, %s657_s14  ;;  %s241_s23 = sshll.u32 %s233_s22, 4  ;;  %s242_s23 = int_to_ptr.vmem [resolvable:$true] %s241_s23 }
  0x21   : > { %s239_s24 = sshll.u32 %s237_s17, 4  ;;  %p1209_p7 = pnand %p796_p2, %p1182_p11  ;;  %s240_s24 = int_to_ptr.hbm [resolvable:$true] %s239_s24 }
  0x22   : > { %s230_s28 = scalar_lea.sflag [#allocation3], %s229_s10  ;;  %s965_s30 = sshra.s32 %s240_s24, 4  ;;  %s966_s30 = int_to_ptr.hbm [resolvable:$true] %s965_s30 }
  0x23   : > { %s967_s6 = scalar_lea.hbm %s966_s30, 4  ;;  %p969_p9 = pneg %p1209_p7 }
  0x24   : > { %p968_p8 = scmp.ne.s32.totalorder %s966_s30, %s967_s6  ;;  %s972_s15 = scalar_lea.hbm %s1276_s0, 8 }
  0x25   : > { %p973_p11 = scmp.lt.s32.totalorder %s966_s30, %s1276_s0  ;;  %p974_p0 = scmp.lt.s32.totalorder %s972_s15, %s967_s6 }
  0x26   : > { %p970_p10 = pnand %p969_p9, %p968_p8 }
  0x27   : > { %p975_p2 = por %p974_p0, %p973_p11 }
  0x28   : > { %p971_p13 = pneg %p970_p10 }
  0x2a   : > { %p976_p5 = pnand %p975_p2, %p971_p13 }
  0x2c   : > { %979 = shalt.err (!%p976_p5)
}
  0x2d   : > { %787 = dma.hbm_to_vmem [thread:$0]  (!%p1209_p7), %s240_s24, 64, %s242_s23, %s230_s28  }
  0x2e   : > { %250 = sbr.rel (%p1137_p3) target bundleno = 889 (0x379), region = 40  ;;  %s1226_s10 = sand.u32 (!%p1137_p3), 1, %s1061_s19  }
  0x2f   : > { %s659_s17 = sshll.u32 (!%p1137_p3), %s1226_s10, 2  ;;  %s253_s22 = scalar_lea.sflag (!%p1137_p3), [#allocation3], %s1226_s10 }
  0x30   : > { %s256_s13 = scalar_lea.vmem (!%p1137_p3), [#allocation2], %s659_s17 }
  0x33   : > { %1040 = dma.done.wait (%p1188_p12), %s253_s22, 64  }
  0x34   : > { %1042 = vsyncadd (%p1188_p12), %s253_s22, 4294967232 }
  0x35   : > { %1044 = dma.done.wait (%p44_p1), [#allocation6], 1152  }
  0x36   : > { %1046 = vsyncadd (%p44_p1), [#allocation6], 4294966144 }
  0x37   : > { %1048 = dma.done.wait (%p44_p1), [#allocation9], 1152  }
  0x38   : > { %1050 = vsyncadd (%p44_p1), [#allocation9], 4294966144  ;;  %v742_v0 = vld [vmem:[#allocation5 + $0x38] sm:$0xff]  ;;  %v741_v1 = vld [vmem:[#allocation5 + $0x30] sm:$0xff]  ;;  %v384_v14 = vlaneseq  ;;  %v1077_v18 = vmov 0.0   ;;  %s664_s26 = sshll.u32 %s1226_s10, 3 }
  0x39   : > { %371 = vmatpush.bf16.msra.mxu0 %v742_v0  ;;  %v740_v2 = vld [vmem:[#allocation5 + $0x28] sm:$0xff]  ;;  %v739_v3 = vld [vmem:[#allocation5 + $0x20] sm:$0xff]  ;;  %v738_v4 = vld [vmem:[#allocation5 + $0x18] sm:$0xff]  ;;  %s732_s7 = sshll.u32 %s1132_s25, 3  ;;  %s303_s28 = scalar_lea.vmem [#allocation11], %s664_s26 }
  0x3a   : > { %v737_v5 = vld [vmem:[#allocation5 + $0x10] sm:$0xff]  ;;  %v736_v6 = vld [vmem:[#allocation5 + $0x8] sm:$0xff]  ;;  %v735_v7 = vld [vmem:[#allocation5] sm:$0xff]  ;;  %v385_v15 = vand.u32 127, %v384_v14  ;;  %s536_s27 = scalar_lea.hbm %s1281_s5, %s732_s7  ;;  %s538_s30 = sshll.u32 %s303_s28, 4  ;;  %s539_s30 = int_to_ptr.vmem [resolvable:$true] %s538_s30 }
  0x3b   : > { %v304_v8 = vld [vmem:[%s256_s13] sm:$0xf]  ;;  %v321_v9 = vld [vmem:[#allocation7] sm:$0xff]  ;;  %v748_v25 = vld [vmem:[#allocation8 + $0x28] sm:$0xff]  ;;  %s540_s6 = sshll.u32 %s536_s27, 4  ;;  %s526_s25 = scalar_lea.sflag [#allocation4], %s1226_s10  ;;  %s541_s6 = int_to_ptr.hbm [resolvable:$true] %s540_s6 }
  0x3c   : > { %v322_v10 = vperm.slane %v321_v9, 0  ;;  %vm386_vm0 = vcmp.lt.s32.totalorder %v385_v15, 64  ;;  %v750_v23 = vld [vmem:[#allocation8 + $0x38] sm:$0xff]  ;;  %v749_v24 = vld [vmem:[#allocation8 + $0x30] sm:$0xff]  ;;  %v747_v26 = vld [vmem:[#allocation8 + $0x20] sm:$0xff]  ;;  %v410_v40 = vperm.slane %v321_v9, 1 }
  0x3d   : > { %372 = vmatpush.bf16.msra.mxu0 %v741_v1  ;;  %v697_v19 = vsel %vm386_vm0, 1.0, %v1077_v18  ;;  %482 = vmatpush.bf16.msra.mxu1 %v750_v23  ;;  %v746_v27 = vld [vmem:[#allocation8 + $0x18] sm:$0xff]  ;;  %v745_v28 = vld [vmem:[#allocation8 + $0x10] sm:$0xff]  ;;  %v744_v29 = vld [vmem:[#allocation8 + $0x8] sm:$0xff]  ;;  %v412_v43 = vperm.slane %v321_v9, 2  ;;  %vm495_vm4 = vcmp.lt.s32.totalorder %v385_v15, 32 }
  0x3e   : > { %v743_v30 = vld [vmem:[#allocation8] sm:$0xff]  ;;  %v730_v55 = vsel %vm495_vm4, 1.0, %v1077_v18  ;;  %s1009_s14 = sshra.s32 %s541_s6, 4  ;;  %s1015_s17 = scalar_lea.hbm %s1281_s5, 16  ;;  %s1010_s14 = int_to_ptr.hbm [resolvable:$true] %s1009_s14 }
  0x3f   : > { %v432_v48 = vld [vmem:[#allocation10] sm:$0xff]  ;;  %s1011_s15 = scalar_lea.hbm %s1010_s14, 8  ;;  %p1016_p12 = scmp.lt.s32.totalorder %s1010_s14, %s1281_s5 }
  0x40   : > { %v433_v49 = vperm.slane %v432_v48, 0  ;;  %p1012_p1 = scmp.ne.s32.totalorder %s1010_s14, %s1011_s15  ;;  %p1017_p7 = scmp.lt.s32.totalorder %s1015_s17, %s1011_s15 }
  0x41   : > { %373 = vmatpush.bf16.msra.mxu0 %v740_v2  ;;  %483 = vmatpush.bf16.msra.mxu1 %v749_v24 }
  0x42   : > { %p1013_p3 = pnand %p1012_p1, %p1195_p4  ;;  %p1018_p8 = por %p1017_p7, %p1016_p12 }
  0x44   : > { %p1014_p5 = pneg %p1013_p3 }
  0x45   : > { %374 = vmatpush.bf16.msra.mxu0 %v739_v3  ;;  %484 = vmatpush.bf16.msra.mxu1 %v748_v25 }
  0x46   : > { %p1019_p9 = pnand %p1018_p8, %p1014_p5 }
  0x49   : > { %375 = vmatpush.bf16.msra.mxu0 %v738_v4  ;;  %485 = vmatpush.bf16.msra.mxu1 %v747_v26  ;;  %v519_v4 = vperm.slane %v432_v48, 1 }
  0x4d   : > { %376 = vmatpush.bf16.msra.mxu0 %v737_v5  ;;  %486 = vmatpush.bf16.msra.mxu1 %v746_v27 }
  0x51   : > { %377 = vmatpush.bf16.msra.mxu0 %v736_v6  ;;  %487 = vmatpush.bf16.msra.mxu1 %v745_v28  ;;  %v521_v6 = vperm.slane %v432_v48, 2 }
  0x55   : > { %378 = vmatpush.bf16.msra.mxu0 %v735_v7  ;;  %488 = vmatpush.bf16.msra.mxu1 %v744_v29 }
  0x58   : > { %379 = vmatmul.bf16.vlgmr.msra.gmra.mxu0 %v304_v8 }
  0x59   : > { %489 = vmatpush.bf16.msra.mxu1 %v743_v30 }
  0xd5   : > { %v380_v11 = vpop.f32.mrf.mxu0 }
  0xd6   : > { %v381_v12 = vadd.f32 %v380_v11, %v322_v10 }
  0xd8   : > { %389 = vadd.xlane.f32.xlu0 %v381_v12 }
  0xdd   : > { %v382_v13 = vpop.f32.mrf.mxu0 }
 0x14b   : > { %v390_v16 = vpop.xlane.xlu0 %389 }
 0x14c   : > { %v391_v17 = vmul.f32 0.015625, %v390_v16 }
 0x14e   : > { %v392_v20 = vsub.f32 %v381_v12, %v391_v17 }
 0x150   : > { %v393_v21 = vmul.f32 %v697_v19, %v392_v20 }
 0x152   : > { %v394_v22 = vmul.f32 %v393_v21, %v393_v21 }
 0x154   : > { %395 = vadd.xlane.f32.xlu0 %v394_v22 }
 0x1c7   : > { %v396_v31 = vpop.xlane.xlu0 %395 }
 0x1c8   : > { %v397_v32 = vmul.f32 0.015625, %v396_v31 }
 0x1ca   : > { %v398_v33 = vadd.f32 1e-05, %v397_v32 }
 0x1cc   : > { %841 = vrsqrt.f32 %v398_v33  ;;  %vm405_vm2 = vweird.f32 %v398_v33 }
 0x1d2   : > { %v842_v34 = vpop.eup %841 }
 0x1d3   : > { %v400_v35 = vmul.f32 %v842_v34, %v398_v33  ;;  %vm406_vm1 = vweird.f32 %v842_v34 }
 0x1d4   : > { %vm407_vm3 = vmor %vm405_vm2, %vm406_vm1 }
 0x1d5   : > { %v401_v36 = vmul.f32 %v842_v34, %v400_v35 }
 0x1d7   : > { %v402_v37 = vmul.f32 0.5, %v401_v36 }
 0x1d9   : > { %v403_v38 = vsub.f32 1.5, %v402_v37 }
 0x1db   : > { %v404_v39 = vmul.f32 %v842_v34, %v403_v38 }
 0x1dd   : > { %v408_v41 = vsel %vm407_vm3, %v842_v34, %v404_v39 }
 0x1de   : > { %v409_v42 = vmul.f32 %v408_v41, %v393_v21 }
 0x1e0   : > { %v411_v44 = vmul.f32 %v410_v40, %v409_v42 }
 0x1e2   : > { %v413_v45 = vadd.f32 %v412_v43, %v411_v44 }
 0x1e4   : > { %v414_v46 = vmax.f32 %v413_v45, 0.0 }
 0x1e6   : > { %v415_v47 = vpack.c.bf16 %v414_v46, %v414_v46 }
 0x1e8   : > { %490 = vmatmul.bf16.vlgmr.msra.gmra.mxu1 %v415_v47 }
 0x265   : > { %v491_v50 = vpop.f32.mrf.mxu1 }
 0x266   : > { %v492_v51 = vadd.f32 %v491_v50, %v433_v49 }
 0x268   : > { %498 = vadd.xlane.f32.xlu1 %v492_v51 }
 0x26d   : > { %v493_v52 = vpop.f32.mrf.mxu1 }
 0x2db   : > { %v499_v53 = vpop.xlane.xlu1 %498 }
 0x2dc   : > { %v500_v54 = vmul.f32 0.03125, %v499_v53 }
 0x2de   : > { %v501_v56 = vsub.f32 %v492_v51, %v500_v54 }
 0x2e0   : > { %v502_v57 = vmul.f32 %v730_v55, %v501_v56 }
 0x2e2   : > { %v503_v58 = vmul.f32 %v502_v57, %v502_v57 }
 0x2e4   : > { %504 = vadd.xlane.f32.xlu1 %v503_v58 }
 0x357   : > { %v505_v59 = vpop.xlane.xlu1 %504 }
 0x358   : > { %v506_v60 = vmul.f32 0.03125, %v505_v59 }
 0x35a   : > { %v507_v61 = vadd.f32 1e-05, %v506_v60 }
 0x35c   : > { %843 = vrsqrt.f32 %v507_v61  ;;  %vm514_vm6 = vweird.f32 %v507_v61 }
 0x362   : > { %v844_v62 = vpop.eup %843 }
 0x363   : > { %v509_v63 = vmul.f32 %v844_v62, %v507_v61  ;;  %vm515_vm5 = vweird.f32 %v844_v62 }
 0x364   : > { %vm516_vm7 = vmor %vm514_vm6, %vm515_vm5 }
 0x365   : > { %v510_v0 = vmul.f32 %v844_v62, %v509_v63 }
 0x367   : > { %v511_v1 = vmul.f32 0.5, %v510_v0 }
 0x369   : > { %v512_v2 = vsub.f32 1.5, %v511_v1 }
 0x36b   : > { %v513_v3 = vmul.f32 %v844_v62, %v512_v2 }
 0x36d   : > { %v517_v5 = vsel %vm516_vm7, %v844_v62, %v513_v3 }
 0x36e   : > { %v518_v7 = vmul.f32 %v517_v5, %v502_v57 }
 0x370   : > { %v520_v8 = vmul.f32 %v519_v4, %v518_v7 }
 0x372   : > { %v522_v9 = vadd.f32 %v521_v6, %v520_v8 }
 0x374   : > { %v523_v10 = vmax.f32 %v522_v9, 0.0 }
 0x376   : > { %524 = vst [vmem:[%s303_s28] sm:$0xff] %v523_v10 }
 0x377   : > { %1022 = shalt.err (!%p1019_p9)
}
 0x378   : > { %769 = dma.vmem_to_hbm [thread:$0]  (%p1195_p4), %s539_s30, 128, %s541_s6, %s526_s25  }
 0x379 PF: > { %s552_s10 = sand.u32 1, %s1057_s18   ;;  %p1289_p10 = scmp.ge.s32.totalorder %s1069_s21, 2 }
 0x37a   : > { %s553_s26 = scalar_lea.sflag [#allocation4], %s552_s10 }
 0x37b   : > { %p789_p13 = pnand %p1289_p10, %p1199_p6 }
 0x37d   : > { %p790_p11 = pneg %p789_p13 }
 0x37f   : > { %1052 = dma.done.wait (%p790_p11), %s553_s26, 128  }
 0x380   : > { %1054 = vsyncadd (%p790_p11), %s553_s26, 4294967168  ;;  %p20_p0 = scmp.ge.s32.totalorder %s1169_s29, 4   ;;  %s1290_s18 = smov %s1061_s19 }
 0x381   : > { %s1291_s19 = smov %s1065_s20  ;;  %s1292_s20 = smov %s1180_s8 }
 0x382   : > { %s1293_s21 = smov %s1169_s29  ;;  %22 = sbr.rel (!%p20_p0) target bundleno = 7 (0x7), region = 101 }
 0x387   :  { %559 = vsyncpa [#allocation3], 1 }
 0x388   :  { %561 = vsyncpa [#allocation3 + $0x1], 1 }
 0x389   :  { %562 = vsyncpa [#allocation6], 1 }
 0x38a   :  { %563 = vsyncpa [#allocation9], 1 }
 0x38b   :  { %564 = vsyncpa [#allocation4], 1 }
 0x38c   :  { %566 = vsyncpa [#allocation4 + $0x1], 1 }

// kernel: tpu_custom_call.1
= control target key start
LH: loop header
LB: loop body
LE: loop exit
PB: predicated region body
PF: predicated region fallthrough
CT: control target
= control target key end

     0   :  { %10 = vsyncpa [#allocation3], 0  ;;  %s1276_s0 = inlined_call_operand.hbm [shape: bf16[16,128], index: 0, kind: input, shape index: {}]   ;;  %s1277_s1 = inlined_call_operand.hbm [shape: bf16[128,128], index: 1, kind: input, shape index: {}]   ;;  %s1278_s2 = inlined_call_operand.hbm [shape: f32[8,128], index: 2, kind: input, shape index: {}]   ;;  %s1279_s3 = inlined_call_operand.hbm [shape: bf16[128,128], index: 3, kind: input, shape index: {}]   ;;  %s1280_s4 = inlined_call_operand.hbm [shape: f32[8,128], index: 4, kind: input, shape index: {}]   ;;  %s1281_s5 = inlined_call_operand.hbm [shape: f32[16,128], index: 5, kind: output, shape index: {}]  }
   0x1   :  { %12 = vsyncpa [#allocation3 + $0x1], 0 }
   0x2   :  { %13 = vsyncpa [#allocation6], 0 }
   0x3   :  { %14 = vsyncpa [#allocation9], 0 }
   0x4   :  { %15 = vsyncpa [#allocation4], 0 }
   0x5   :  { %17 = vsyncpa [#allocation4 + $0x1], 0  ;;  %s1108_s18 = smov 0   ;;  %s1110_s19 = smov 0  }
   0x6   :  { %s1112_s20 = smov 0   ;;  %s1114_s21 = smov 0  }
   0x7 LB: > { %s175_s24 = sshll.u32 %s1277_s1, 4  ;;  %s1132_s25 = sadd.s32 4294967295, %s1069_s21   ;;  %s1069_s21 = sphi %s1114_s21, %s1293_s21   ;;  %s1065_s20 = sphi %s1112_s20, %s1292_s20   ;;  %s1061_s19 = sphi %s1110_s19, %s1291_s19   ;;  %s1057_s18 = sphi %s1108_s18, %s1290_s18   ;;  %s176_s24 = int_to_ptr.hbm [resolvable:$true] %s175_s24 }
   0x8   : > { %p650_p0 = scmp.ge.s32.totalorder %s1069_s21, 1  ;;  %p44_p1 = scmp.eq.s32.totalorder %s1132_s25, 0 }
   0x9   : > { %p164_p2 = scmp.lt.s32.totalorder %s1069_s21, 3  ;;  %s1071_s27 = smov [#allocation5]  }
   0xa   : > { %s177_s28 = sshll.u32 %s1071_s27, 4  ;;  %s201_s6 = sshll.u32 %s1279_s3, 4  ;;  %s178_s28 = int_to_ptr.vmem [resolvable:$true] %s177_s28  ;;  %s202_s6 = int_to_ptr.hbm [resolvable:$true] %s201_s6 }
   0xb   : > { %p1137_p3 = pnand %p650_p0, %p164_p2  ;;  %s190_s10 = sshll.u32 %s1278_s2, 4  ;;  %s191_s10 = int_to_ptr.hbm [resolvable:$true] %s190_s10 }
   0xc   : > { %s1072_s11 = smov [#allocation8]   ;;  %s1073_s13 = smov 64  }
   0xd   : > { %p771_p4 = pneg %p1137_p3  ;;  %s203_s12 = sshll.u32 %s1072_s11, 4  ;;  %s204_s12 = int_to_ptr.vmem [resolvable:$true] %s203_s12 }
   0xe   : > { %s1074_s14 = smov 4   ;;  %s216_s17 = sshll.u32 %s1280_s4, 4  ;;  %s217_s17 = int_to_ptr.hbm [resolvable:$true] %s216_s17 }
   0xf   : > { %p1149_p6 = pnand %p771_p4, %p44_p1  ;;  %s1075_s22 = smov [#allocation7]  }
  0x10   : > { %s192_s23 = sshll.u32 %s1075_s22, 4  ;;  %s1169_s29 = sadd.s32 1, %s1069_s21   ;;  %s193_s23 = int_to_ptr.vmem [resolvable:$true] %s192_s23 }
  0x11   : > { %774 = dma.hbm_to_vmem [thread:$0]  (!%p1149_p6), %s176_s24, 1024, %s178_s28, [#allocation6], %s1073_s13, %s1073_s13, %s1074_s14  }
  0x12   : > { %780 = dma.hbm_to_vmem [thread:$0]  (!%p1149_p6), %s202_s6, 1024, %s204_s12, [#allocation9], %s1073_s13, %s1073_s13, %s1074_s14  }
  0x13   : > { %777 = dma.hbm_to_vmem [thread:$0]  (!%p1149_p6), %s191_s10, 128, %s193_s23, [#allocation6]  }
  0x14   : > { %s1076_s24 = smov [#allocation10]   ;;  %s649_s28 = sadd.s32 4294967294, %s1069_s21  }
  0x15   : > { %s218_s27 = sshll.u32 %s1076_s24, 4  ;;  %s27_s30 = ssub.s32 %s1069_s21, %s1169_s29  ;;  %s219_s27 = int_to_ptr.vmem [resolvable:$true] %s218_s27 }
  0x16   : > { %783 = dma.hbm_to_vmem [thread:$0]  (!%p1149_p6), %s217_s17, 128, %s219_s27, [#allocation9]  }
  0x17   : > { %s30_s6 = sadd.s32 1, %s1065_s20  ;;  %p28_p7 = scmp.eq.s32.totalorder %s27_s30, 0 }
  0x18   : > { %p37_p8 = scmp.ne.s32.totalorder %s1065_s20, %s1061_s19  ;;  %p38_p9 = scmp.eq.s32.totalorder %s1069_s21, 0 }
  0x19   : > { %p43_p10 = scmp.ne.s32.totalorder %s1061_s19, %s1057_s18  ;;  %p151_p13 = scmp.eq.s32.totalorder %s1132_s25, 1 }
  0x1a   : > { %s1180_s8 = scalar_select %p28_p7, %s1065_s20, %s30_s6  }
  0x1b   : > { %p1182_p11 = por %p38_p9, %p37_p8  ;;  %p1188_p12 = por %p44_p1, %p43_p10 }
  0x1c   : > { %p157_p0 = scmp.eq.s32.totalorder %s649_s28, 1  ;;  %p796_p2 = scmp.lt.s32.totalorder %s1069_s21, 2 }
  0x1d   : > { %s229_s10 = sand.u32 1, %s1065_s20   ;;  %p1195_p4 = por %p151_p13, %p37_p8 }
  0x1e   : > { %p1199_p6 = por %p157_p0, %p43_p10  ;;  %s656_s13 = sshll.u32 %s229_s10, 2 }
  0x1f   : > { %s657_s14 = sshll.u32 %s1069_s21, 2  ;;  %s233_s22 = scalar_lea.vmem [#allocation2], %s656_s13 }
  0x20   : > { %s237_s17 = scalar_lea.hbm %s1276_s0, %s657_s14  ;;  %s241_s23 = sshll.u32 %s233_s22, 4  ;;  %s242_s23 = int_to_ptr.vmem [resolvable:$true] %s241_s23 }
  0x21   : > { %s239_s24 = sshll.u32 %s237_s17, 4  ;;  %p1209_p7 = pnand %p796_p2, %p1182_p11  ;;  %s240_s24 = int_to_ptr.hbm [resolvable:$true] %s239_s24 }
  0x22   : > { %s230_s28 = scalar_lea.sflag [#allocation3], %s229_s10  ;;  %s965_s30 = sshra.s32 %s240_s24, 4  ;;  %s966_s30 = int_to_ptr.hbm [resolvable:$true] %s965_s30 }
  0x23   : > { %s967_s6 = scalar_lea.hbm %s966_s30, 4  ;;  %p969_p9 = pneg %p1209_p7 }
  0x24   : > { %p968_p8 = scmp.ne.s32.totalorder %s966_s30, %s967_s6  ;;  %s972_s15 = scalar_lea.hbm %s1276_s0, 8 }
  0x25   : > { %p973_p11 = scmp.lt.s32.totalorder %s966_s30, %s1276_s0  ;;  %p974_p0 = scmp.lt.s32.totalorder %s972_s15, %s967_s6 }
  0x26   : > { %p970_p10 = pnand %p969_p9, %p968_p8 }
  0x27   : > { %p975_p2 = por %p974_p0, %p973_p11 }
  0x28   : > { %p971_p13 = pneg %p970_p10 }
  0x2a   : > { %p976_p5 = pnand %p975_p2, %p971_p13 }
  0x2c   : > { %979 = shalt.err (!%p976_p5)
}
  0x2d   : > { %787 = dma.hbm_to_vmem [thread:$0]  (!%p1209_p7), %s240_s24, 64, %s242_s23, %s230_s28  }
  0x2e   : > { %250 = sbr.rel (%p1137_p3) target bundleno = 889 (0x379), region = 40  ;;  %s1226_s10 = sand.u32 (!%p1137_p3), 1, %s1061_s19  }
  0x2f   : > { %s659_s17 = sshll.u32 (!%p1137_p3), %s1226_s10, 2  ;;  %s253_s22 = scalar_lea.sflag (!%p1137_p3), [#allocation3], %s1226_s10 }
  0x30   : > { %s256_s13 = scalar_lea.vmem (!%p1137_p3), [#allocation2], %s659_s17 }
  0x33   : > { %1040 = dma.done.wait (%p1188_p12), %s253_s22, 64  }
  0x34   : > { %1042 = vsyncadd (%p1188_p12), %s253_s22, 4294967232 }
  0x35   : > { %1044 = dma.done.wait (%p44_p1), [#allocation6], 1152  }
  0x36   : > { %1046 = vsyncadd (%p44_p1), [#allocation6], 4294966144 }
  0x37   : > { %1048 = dma.done.wait (%p44_p1), [#allocation9], 1152  }
  0x38   : > { %1050 = vsyncadd (%p44_p1), [#allocation9], 4294966144  ;;  %v742_v0 = vld [vmem:[#allocation5 + $0x38] sm:$0xff]  ;;  %v741_v1 = vld [vmem:[#allocation5 + $0x30] sm:$0xff]  ;;  %v384_v14 = vlaneseq  ;;  %v1077_v18 = vmov 0.0   ;;  %s664_s26 = sshll.u32 %s1226_s10, 3 }
  0x39   : > { %371 = vmatpush.bf16.msra.mxu0 %v742_v0  ;;  %v740_v2 = vld [vmem:[#allocation5 + $0x28] sm:$0xff]  ;;  %v739_v3 = vld [vmem:[#allocation5 + $0x20] sm:$0xff]  ;;  %v738_v4 = vld [vmem:[#allocation5 + $0x18] sm:$0xff]  ;;  %s732_s7 = sshll.u32 %s1132_s25, 3  ;;  %s303_s28 = scalar_lea.vmem [#allocation11], %s664_s26 }
  0x3a   : > { %v737_v5 = vld [vmem:[#allocation5 + $0x10] sm:$0xff]  ;;  %v736_v6 = vld [vmem:[#allocation5 + $0x8] sm:$0xff]  ;;  %v735_v7 = vld [vmem:[#allocation5] sm:$0xff]  ;;  %v385_v15 = vand.u32 127, %v384_v14  ;;  %s536_s27 = scalar_lea.hbm %s1281_s5, %s732_s7  ;;  %s538_s30 = sshll.u32 %s303_s28, 4  ;;  %s539_s30 = int_to_ptr.vmem [resolvable:$true] %s538_s30 }
  0x3b   : > { %v304_v8 = vld [vmem:[%s256_s13] sm:$0xf]  ;;  %v321_v9 = vld [vmem:[#allocation7] sm:$0xff]  ;;  %v748_v25 = vld [vmem:[#allocation8 + $0x28] sm:$0xff]  ;;  %s540_s6 = sshll.u32 %s536_s27, 4  ;;  %s526_s25 = scalar_lea.sflag [#allocation4], %s1226_s10  ;;  %s541_s6 = int_to_ptr.hbm [resolvable:$true] %s540_s6 }
  0x3c   : > { %v322_v10 = vperm.slane %v321_v9, 0  ;;  %vm386_vm0 = vcmp.lt.s32.totalorder %v385_v15, 64  ;;  %v750_v23 = vld [vmem:[#allocation8 + $0x38] sm:$0xff]  ;;  %v749_v24 = vld [vmem:[#allocation8 + $0x30] sm:$0xff]  ;;  %v747_v26 = vld [vmem:[#allocation8 + $0x20] sm:$0xff]  ;;  %v410_v40 = vperm.slane %v321_v9, 1 }
  0x3d   : > { %372 = vmatpush.bf16.msra.mxu0 %v741_v1  ;;  %v697_v19 = vsel %vm386_vm0, 1.0, %v1077_v18  ;;  %482 = vmatpush.bf16.msra.mxu1 %v750_v23  ;;  %v746_v27 = vld [vmem:[#allocation8 + $0x18] sm:$0xff]  ;;  %v745_v28 = vld [vmem:[#allocation8 + $0x10] sm:$0xff]  ;;  %v744_v29 = vld [vmem:[#allocation8 + $0x8] sm:$0xff]  ;;  %v412_v43 = vperm.slane %v321_v9, 2  ;;  %vm495_vm4 = vcmp.lt.s32.totalorder %v385_v15, 32 }
  0x3e   : > { %v743_v30 = vld [vmem:[#allocation8] sm:$0xff]  ;;  %v730_v55 = vsel %vm495_vm4, 1.0, %v1077_v18  ;;  %s1009_s14 = sshra.s32 %s541_s6, 4  ;;  %s1015_s17 = scalar_lea.hbm %s1281_s5, 16  ;;  %s1010_s14 = int_to_ptr.hbm [resolvable:$true] %s1009_s14 }
  0x3f   : > { %v432_v48 = vld [vmem:[#allocation10] sm:$0xff]  ;;  %s1011_s15 = scalar_lea.hbm %s1010_s14, 8  ;;  %p1016_p12 = scmp.lt.s32.totalorder %s1010_s14, %s1281_s5 }
  0x40   : > { %v433_v49 = vperm.slane %v432_v48, 0  ;;  %p1012_p1 = scmp.ne.s32.totalorder %s1010_s14, %s1011_s15  ;;  %p1017_p7 = scmp.lt.s32.totalorder %s1015_s17, %s1011_s15 }
  0x41   : > { %373 = vmatpush.bf16.msra.mxu0 %v740_v2  ;;  %483 = vmatpush.bf16.msra.mxu1 %v749_v24 }
  0x42   : > { %p1013_p3 = pnand %p1012_p1, %p1195_p4  ;;  %p1018_p8 = por %p1017_p7, %p1016_p12 }
  0x44   : > { %p1014_p5 = pneg %p1013_p3 }
  0x45   : > { %374 = vmatpush.bf16.msra.mxu0 %v739_v3  ;;  %484 = vmatpush.bf16.msra.mxu1 %v748_v25 }
  0x46   : > { %p1019_p9 = pnand %p1018_p8, %p1014_p5 }
  0x49   : > { %375 = vmatpush.bf16.msra.mxu0 %v738_v4  ;;  %485 = vmatpush.bf16.msra.mxu1 %v747_v26  ;;  %v519_v4 = vperm.slane %v432_v48, 1 }
  0x4d   : > { %376 = vmatpush.bf16.msra.mxu0 %v737_v5  ;;  %486 = vmatpush.bf16.msra.mxu1 %v746_v27 }
  0x51   : > { %377 = vmatpush.bf16.msra.mxu0 %v736_v6  ;;  %487 = vmatpush.bf16.msra.mxu1 %v745_v28  ;;  %v521_v6 = vperm.slane %v432_v48, 2 }
  0x55   : > { %378 = vmatpush.bf16.msra.mxu0 %v735_v7  ;;  %488 = vmatpush.bf16.msra.mxu1 %v744_v29 }
  0x58   : > { %379 = vmatmul.bf16.vlgmr.msra.gmra.mxu0 %v304_v8 }
  0x59   : > { %489 = vmatpush.bf16.msra.mxu1 %v743_v30 }
  0xd5   : > { %v380_v11 = vpop.f32.mrf.mxu0 }
  0xd6   : > { %v381_v12 = vadd.f32 %v380_v11, %v322_v10 }
  0xd8   : > { %389 = vadd.xlane.f32.xlu0 %v381_v12 }
  0xdd   : > { %v382_v13 = vpop.f32.mrf.mxu0 }
 0x14b   : > { %v390_v16 = vpop.xlane.xlu0 %389 }
 0x14c   : > { %v391_v17 = vmul.f32 0.015625, %v390_v16 }
 0x14e   : > { %v392_v20 = vsub.f32 %v381_v12, %v391_v17 }
 0x150   : > { %v393_v21 = vmul.f32 %v697_v19, %v392_v20 }
 0x152   : > { %v394_v22 = vmul.f32 %v393_v21, %v393_v21 }
 0x154   : > { %395 = vadd.xlane.f32.xlu0 %v394_v22 }
 0x1c7   : > { %v396_v31 = vpop.xlane.xlu0 %395 }
 0x1c8   : > { %v397_v32 = vmul.f32 0.015625, %v396_v31 }
 0x1ca   : > { %v398_v33 = vadd.f32 1e-05, %v397_v32 }
 0x1cc   : > { %841 = vrsqrt.f32 %v398_v33  ;;  %vm405_vm2 = vweird.f32 %v398_v33 }
 0x1d2   : > { %v842_v34 = vpop.eup %841 }
 0x1d3   : > { %v400_v35 = vmul.f32 %v842_v34, %v398_v33  ;;  %vm406_vm1 = vweird.f32 %v842_v34 }
 0x1d4   : > { %vm407_vm3 = vmor %vm405_vm2, %vm406_vm1 }
 0x1d5   : > { %v401_v36 = vmul.f32 %v842_v34, %v400_v35 }
 0x1d7   : > { %v402_v37 = vmul.f32 0.5, %v401_v36 }
 0x1d9   : > { %v403_v38 = vsub.f32 1.5, %v402_v37 }
 0x1db   : > { %v404_v39 = vmul.f32 %v842_v34, %v403_v38 }
 0x1dd   : > { %v408_v41 = vsel %vm407_vm3, %v842_v34, %v404_v39 }
 0x1de   : > { %v409_v42 = vmul.f32 %v408_v41, %v393_v21 }
 0x1e0   : > { %v411_v44 = vmul.f32 %v410_v40, %v409_v42 }
 0x1e2   : > { %v413_v45 = vadd.f32 %v412_v43, %v411_v44 }
 0x1e4   : > { %v414_v46 = vmax.f32 %v413_v45, 0.0 }
 0x1e6   : > { %v415_v47 = vpack.c.bf16 %v414_v46, %v414_v46 }
 0x1e8   : > { %490 = vmatmul.bf16.vlgmr.msra.gmra.mxu1 %v415_v47 }
 0x265   : > { %v491_v50 = vpop.f32.mrf.mxu1 }
 0x266   : > { %v492_v51 = vadd.f32 %v491_v50, %v433_v49 }
 0x268   : > { %498 = vadd.xlane.f32.xlu1 %v492_v51 }
 0x26d   : > { %v493_v52 = vpop.f32.mrf.mxu1 }
 0x2db   : > { %v499_v53 = vpop.xlane.xlu1 %498 }
 0x2dc   : > { %v500_v54 = vmul.f32 0.03125, %v499_v53 }
 0x2de   : > { %v501_v56 = vsub.f32 %v492_v51, %v500_v54 }
 0x2e0   : > { %v502_v57 = vmul.f32 %v730_v55, %v501_v56 }
 0x2e2   : > { %v503_v58 = vmul.f32 %v502_v57, %v502_v57 }
 0x2e4   : > { %504 = vadd.xlane.f32.xlu1 %v503_v58 }
 0x357   : > { %v505_v59 = vpop.xlane.xlu1 %504 }
 0x358   : > { %v506_v60 = vmul.f32 0.03125, %v505_v59 }
 0x35a   : > { %v507_v61 = vadd.f32 1e-05, %v506_v60 }
 0x35c   : > { %843 = vrsqrt.f32 %v507_v61  ;;  %vm514_vm6 = vweird.f32 %v507_v61 }
 0x362   : > { %v844_v62 = vpop.eup %843 }
 0x363   : > { %v509_v63 = vmul.f32 %v844_v62, %v507_v61  ;;  %vm515_vm5 = vweird.f32 %v844_v62 }
 0x364   : > { %vm516_vm7 = vmor %vm514_vm6, %vm515_vm5 }
 0x365   : > { %v510_v0 = vmul.f32 %v844_v62, %v509_v63 }
 0x367   : > { %v511_v1 = vmul.f32 0.5, %v510_v0 }
 0x369   : > { %v512_v2 = vsub.f32 1.5, %v511_v1 }
 0x36b   : > { %v513_v3 = vmul.f32 %v844_v62, %v512_v2 }
 0x36d   : > { %v517_v5 = vsel %vm516_vm7, %v844_v62, %v513_v3 }
 0x36e   : > { %v518_v7 = vmul.f32 %v517_v5, %v502_v57 }
 0x370   : > { %v520_v8 = vmul.f32 %v519_v4, %v518_v7 }
 0x372   : > { %v522_v9 = vadd.f32 %v521_v6, %v520_v8 }
 0x374   : > { %v523_v10 = vmax.f32 %v522_v9, 0.0 }
 0x376   : > { %524 = vst [vmem:[%s303_s28] sm:$0xff] %v523_v10 }
 0x377   : > { %1022 = shalt.err (!%p1019_p9)
}
 0x378   : > { %769 = dma.vmem_to_hbm [thread:$0]  (%p1195_p4), %s539_s30, 128, %s541_s6, %s526_s25  }
 0x379 PF: > { %s552_s10 = sand.u32 1, %s1057_s18   ;;  %p1289_p10 = scmp.ge.s32.totalorder %s1069_s21, 2 }
 0x37a   : > { %s553_s26 = scalar_lea.sflag [#allocation4], %s552_s10 }
 0x37b   : > { %p789_p13 = pnand %p1289_p10, %p1199_p6 }
 0x37d   : > { %p790_p11 = pneg %p789_p13 }
 0x37f   : > { %1052 = dma.done.wait (%p790_p11), %s553_s26, 128  }
 0x380   : > { %1054 = vsyncadd (%p790_p11), %s553_s26, 4294967168  ;;  %p20_p0 = scmp.ge.s32.totalorder %s1169_s29, 4   ;;  %s1290_s18 = smov %s1061_s19 }
 0x381   : > { %s1291_s19 = smov %s1065_s20  ;;  %s1292_s20 = smov %s1180_s8 }
 0x382   : > { %s1293_s21 = smov %s1169_s29  ;;  %22 = sbr.rel (!%p20_p0) target bundleno = 7 (0x7), region = 101 }
 0x387   :  { %559 = vsyncpa [#allocation3], 1 }
 0x388   :  { %561 = vsyncpa [#allocation3 + $0x1], 1 }
 0x389   :  { %562 = vsyncpa [#allocation6], 1 }
 0x38a   :  { %563 = vsyncpa [#allocation9], 1 }
 0x38b   :  { %564 = vsyncpa [#allocation4], 1 }
 0x38c   :  { %566 = vsyncpa [#allocation4 + $0x1], 1 }

</bundles_post_ra>
